<compile_context>
chip_gen: v7x
topology: tpu7x:2x2x1
jax: 0.10.0
libtpu: 0.0.40
codegen_flags: <defaults>
</compile_context>

<pallas_src>
import functools
import numpy as np
import jax
import jax.numpy as jnp
from jax.experimental import pallas as pl
from jax.experimental.pallas import tpu as pltpu


_VMEM_BUDGET_BYTES = 12 * 1024 * 1024   # x/out double buffers + f32 temps (safe on v5e/v6e/v7x)
_VMEM_LIMIT_CAP = 28 * 1024 * 1024      # stays under v7x's 64 MiB physical / 32 MiB scoped
_TM_MAX = 1024


def _rope_kernel(pos_ref, freq_ref, mask_ref, x_ref, o_ref, *, half, n_heads):
    # pos_ref: (tm, 1) f32 ; freq_ref: (1, h/2) f32 ; mask_ref: (1, n*h) f32
    # x_ref / o_ref: (tm, n*h)
    # Narrow transcendentals: every head shares inv_freq and emb = cat(freqs, freqs),
    # so only h/2 cos + h/2 sin values are needed per row.
    theta = pos_ref[...] * freq_ref[...]                  # (tm, 1) * (1, h/2) -> (tm, h/2)
    c = jnp.cos(theta)
    s = jnp.sin(theta)
    reps = 2 * n_heads                                    # per head: [c, c]; tiled over n heads
    cos_full = jnp.concatenate([c] * reps, axis=-1)       # (tm, n*h) lane copies (no new trig)
    sin_full = jnp.concatenate([s] * reps, axis=-1)

    x = x_ref[...].astype(jnp.float32)                    # (tm, n*h)
    # rotate_half within each head via two full-lane rolls + select.
    # TODO(synk): pltpu.roll would pin this to the XLU; jnp.roll (static slices +
    # concat) is kept for guaranteed semantics and is still far below the HBM roofline.
    x_plus = jnp.roll(x, -half, axis=-1)                  # lane p <- x[p + half]
    x_minus = jnp.roll(x, half, axis=-1)                  # lane p <- x[p - half]
    first_half = mask_ref[...] > 0.5                      # True on 1st half of each head
    rot = jnp.where(first_half, -x_plus, x_minus)         # == rotate_half(x), per head

    o_ref[...] = (x * cos_full + rot * sin_full).astype(o_ref.dtype)


@functools.lru_cache(maxsize=None)
def _rope_tables(n, h, base):
    """Tiny per-(n, h, base) constant rows (host numpy, cached across calls)."""
    half = h // 2
    inv_freq = (1.0 / (base ** (np.arange(0, h, 2, dtype=np.float64) / h))).astype(np.float32)
    freq_row = inv_freq.reshape(1, half)
    first_half_mask = ((np.arange(n * h) % h) < half).astype(np.float32).reshape(1, n * h)
    return freq_row, first_half_mask


def _positions(index_tensor):
    """positions[b, j] = j - start_of_segment(j) for j < sum(lengths), else 0.

    O(B*L*logL) vmapped searchsorted over the inclusive cumsum (replaces the
    O(B*L^2) broadcast formulation).  Zero lengths contribute nothing, matching
    the torch loop over nonzero entries.
    """
    lens = index_tensor.astype(jnp.int32)
    L = lens.shape[1]

    def one(row):
        cum = jnp.cumsum(row)                                        # (L,)
        cum0 = jnp.concatenate([jnp.zeros((1,), jnp.int32), cum])    # (L+1,)
        j = jnp.arange(L, dtype=jnp.int32)
        k = jnp.searchsorted(cum0, j, side="right") - 1              # largest cum0 <= j
        seg_start = jnp.take(cum0, k)
        return jnp.where(j < cum[-1], j - seg_start, 0)

    return jax.vmap(one)(lens).astype(jnp.float32)


@functools.partial(jax.jit, static_argnames=("base",))
def multi_sequence_rope(x, index_tensor, *, base=10000):
    """Forward pass of MultiSequenceRotaryPositionalEncoding(dim=h, base)."""
    B, L, n, h = x.shape
    assert h % 2 == 0, "head dim must be even"
    half = h // 2
    NH = n * h                                            # lane width; densest when NH % 128 == 0
    out_dtype = jnp.promote_types(x.dtype, jnp.float32)   # matches torch promotion (x * f32 cos)

    # TODO(synk): the ragged "nonzero lengths -> concatenated aranges" loop has no clean
    # dense-tile Pallas equivalent; it is tiny O(B*L) work done in plain (jitted) JAX.
    positions = _positions(index_tensor)                  # (B, L) f32
    freq_np, mask_np = _rope_tables(int(n), int(h), int(base))
    freq_row = jnp.asarray(freq_np)                       # compile-time constants under jit
    mask_row = jnp.asarray(mask_np)

    R = B * L
    x2d = x.reshape(R, NH)                                # metadata-only reshape
    pos_col = positions.reshape(R, 1)

    # ---- tile sizing: dtype-aware, VMEM-bounded, >=2 grid steps, divides R ----
    x_item = jnp.dtype(x.dtype).itemsize
    out_item = jnp.dtype(out_dtype).itemsize
    sub = max(8, 32 // x_item, 32 // out_item)            # sublane multiple: 8 f32 / 16 bf16 / 32 i8
    # Double-buffered x + out blocks plus ~6 full-width f32 in-kernel temporaries.
    bytes_per_row = NH * (2 * x_item + 2 * out_item + 6 * 4)
    tm_cap = max(sub, (_VMEM_BUDGET_BYTES // bytes_per_row) // sub * sub)
    tm_cap = min(tm_cap, _TM_MAX)
    if R > sub:                                           # keep >=2 steps so both v7x TCs get work
        tm_cap = min(tm_cap, max(sub, (R // 2) // sub * sub))

    tm = 0
    for cand in range(tm_cap, 0, -sub):                   # largest sublane-multiple divisor of R
        if R % cand == 0:
            tm = cand
            break
    pad = 0
    if tm == 0:
        if R * bytes_per_row <= _VMEM_BUDGET_BYTES and R <= _TM_MAX:
            tm = R                                        # single full block (block dim == array dim)
        else:
            # TODO(synk): awkward R with no sublane-multiple divisor falls back to a padded copy.
            tm = tm_cap
            pad = (-R) % tm
            x2d = jnp.pad(x2d, ((0, pad), (0, 0)))
            pos_col = jnp.pad(pos_col, ((0, pad), (0, 0)))

    grid = ((R + pad) // tm,)
    vmem_limit = int(min(_VMEM_LIMIT_CAP, max(8 * 1024 * 1024, 2 * tm * bytes_per_row)))

    out = pl.pallas_call(
        functools.partial(_rope_kernel, half=half, n_heads=n),
        out_shape=jax.ShapeDtypeStruct((R + pad, NH), out_dtype),
        grid_spec=pltpu.PrefetchScalarGridSpec(
            num_scalar_prefetch=0,
            grid=grid,
            in_specs=[
                pl.BlockSpec((tm, 1), lambda i: (i, 0)),       # per-row positions
                pl.BlockSpec((1, half), lambda i: (0, 0)),     # shared inv_freq row
                pl.BlockSpec((1, NH), lambda i: (0, 0)),       # first-half-of-head lane mask
                pl.BlockSpec((tm, NH), lambda i: (i, 0)),      # x rows
            ],
            out_specs=pl.BlockSpec((tm, NH), lambda i: (i, 0)),
        ),
        compiler_params=pltpu.CompilerParams(
            dimension_semantics=("parallel",),
            vmem_limit_bytes=vmem_limit,
        ),
    )(pos_col, freq_row, mask_row, x2d)

    if pad:
        out = out[:R]
    return out.reshape(B, L, n, h)


# ------------------------------ reference (numpy) ------------------------------
def _rotate_half_np(x):
    h = x.shape[-1]
    return np.concatenate([-x[..., h // 2:], x[..., :h // 2]], axis=-1)


def _reference(x, index_tensor, base=10000):
    x = np.asarray(x, dtype=np.float32)
    idx = np.asarray(index_tensor)
    B, L, n, h = x.shape
    inv_freq = (1.0 / (base ** (np.arange(0, h, 2, dtype=np.float64) / h))).astype(np.float32)
    positions = np.zeros((B, L), dtype=np.float32)
    for i in range(B):
        lengths = idx[i][idx[i] != 0]
        if lengths.size:
            pos = np.concatenate([np.arange(l) for l in lengths])
            positions[i, :pos.shape[0]] = pos
    freqs = np.einsum("bl,d->bld", positions, inv_freq)       # (B, L, h//2)
    emb = np.concatenate([freqs, freqs], axis=-1)             # (B, L, h)
    cos = np.cos(emb)[:, :, None, :]
    sin = np.sin(emb)[:, :, None, :]
    return x * cos + _rotate_half_np(x) * sin


if __name__ == "__main__":
    key = jax.random.PRNGKey(0)
    B, L, n, h = 2, 8, 4, 32
    x = jax.random.normal(key, (B, L, n, h), dtype=jnp.float32)
    index_tensor = jnp.array([[3, 5, 0, 0, 0, 0, 0, 0],
                              [4, 2, 0, 0, 0, 0, 0, 0]], dtype=jnp.int32)

    out = jax.block_until_ready(multi_sequence_rope(x, index_tensor))

    ref = _reference(np.asarray(x), np.asarray(index_tensor))
    assert out.shape == (B, L, n, h), out.shape
    np.testing.assert_allclose(np.asarray(out), ref, rtol=1e-5, atol=1e-5)

    print("KERNEL_OK")
</pallas_src>

<mosaic_0001>
module attributes {stable_mosaic.version = 11 : i64} {
  func.func @_rope_kernel(%arg0: i32, %arg1: memref<8x1xf32, #tpu.memory_space<vmem>>, %arg2: memref<1x16xf32, #tpu.memory_space<vmem>>, %arg3: memref<1x128xf32, #tpu.memory_space<vmem>>, %arg4: memref<8x128xf32, #tpu.memory_space<vmem>>, %arg5: memref<8x128xf32, #tpu.memory_space<vmem>>) attributes {dimension_semantics = [#tpu.dimension_semantics<parallel>], iteration_bounds = array<i64: 2>, scalar_prefetch = 0 : i64, scratch_operands = 0 : i64, tpu.core_type = #tpu.core_type<tc>, window_params = [{transform_indices = @transform_0, window_bounds = array<i64: 8, 1>}, {pipeline_mode = #tpu.pipeline_mode<synchronous>, transform_indices = @transform_1, window_bounds = array<i64: 1, 16>}, {pipeline_mode = #tpu.pipeline_mode<synchronous>, transform_indices = @transform_2, window_bounds = array<i64: 1, 128>}, {transform_indices = @transform_3, window_bounds = array<i64: 8, 128>}, {transform_indices = @transform_4, window_bounds = array<i64: 8, 128>}]} {
    %c0 = arith.constant 0 : index
    %c0_0 = arith.constant 0 : index
    %0 = vector.load %arg1[%c0, %c0_0] : memref<8x1xf32, #tpu.memory_space<vmem>>, vector<8x1xf32>
    %c0_1 = arith.constant 0 : index
    %c0_2 = arith.constant 0 : index
    %1 = vector.load %arg2[%c0_1, %c0_2] : memref<1x16xf32, #tpu.memory_space<vmem>>, vector<1x16xf32>
    %2 = vector.broadcast %0 : vector<8x1xf32> to vector<8x16xf32>
    %3 = vector.broadcast %1 : vector<1x16xf32> to vector<8x16xf32>
    %4 = arith.mulf %2, %3 : vector<8x16xf32>
    %5 = math.cos %4 : vector<8x16xf32>
    %6 = math.sin %4 : vector<8x16xf32>
    %7 = tpu.concatenate %5, %5, %5, %5, %5, %5, %5, %5 in 1 : vector<8x16xf32>, vector<8x16xf32>, vector<8x16xf32>, vector<8x16xf32>, vector<8x16xf32>, vector<8x16xf32>, vector<8x16xf32>, vector<8x16xf32> -> vector<8x128xf32>
    %8 = tpu.concatenate %6, %6, %6, %6, %6, %6, %6, %6 in 1 : vector<8x16xf32>, vector<8x16xf32>, vector<8x16xf32>, vector<8x16xf32>, vector<8x16xf32>, vector<8x16xf32>, vector<8x16xf32>, vector<8x16xf32> -> vector<8x128xf32>
    %c0_3 = arith.constant 0 : index
    %c0_4 = arith.constant 0 : index
    %9 = vector.load %arg4[%c0_3, %c0_4] : memref<8x128xf32, #tpu.memory_space<vmem>>, vector<8x128xf32>
    %10 = vector.extract_strided_slice %9 {offsets = [0, 16], sizes = [8, 112], strides = [1, 1]} : vector<8x128xf32> to vector<8x112xf32>
    %11 = vector.extract_strided_slice %9 {offsets = [0, 0], sizes = [8, 16], strides = [1, 1]} : vector<8x128xf32> to vector<8x16xf32>
    %12 = tpu.concatenate %10, %11 in 1 : vector<8x112xf32>, vector<8x16xf32> -> vector<8x128xf32>
    %13 = vector.extract_strided_slice %9 {offsets = [0, 112], sizes = [8, 16], strides = [1, 1]} : vector<8x128xf32> to vector<8x16xf32>
    %14 = vector.extract_strided_slice %9 {offsets = [0, 0], sizes = [8, 112], strides = [1, 1]} : vector<8x128xf32> to vector<8x112xf32>
    %15 = tpu.concatenate %13, %14 in 1 : vector<8x16xf32>, vector<8x112xf32> -> vector<8x128xf32>
    %c0_5 = arith.constant 0 : index
    %c0_6 = arith.constant 0 : index
    %16 = vector.load %arg3[%c0_5, %c0_6] : memref<1x128xf32, #tpu.memory_space<vmem>>, vector<1x128xf32>
    %cst = arith.constant 5.000000e-01 : f32
    %17 = vector.broadcast %cst : f32 to vector<1x128xf32>
    %18 = arith.cmpf ogt, %16, %17 : vector<1x128xf32>
    %cst_7 = arith.constant 0.000000e+00 : f32
    %19 = vector.broadcast %cst_7 : f32 to vector<8x128xf32>
    %20 = arith.subf %19, %12 : vector<8x128xf32>
    %21 = vector.shape_cast %18 : vector<1x128xi1> to vector<1x128xi1>
    %22 = vector.broadcast %21 : vector<1x128xi1> to vector<8x128xi1>
    %23 = arith.select %22, %20, %15 : vector<8x128xi1>, vector<8x128xf32>
    %24 = arith.mulf %9, %7 : vector<8x128xf32>
    %25 = arith.mulf %23, %8 : vector<8x128xf32>
    %26 = arith.addf %24, %25 : vector<8x128xf32>
    %c0_8 = arith.constant 0 : index
    %c0_9 = arith.constant 0 : index
    %27 = vector.load %arg5[%c0_8, %c0_9] : memref<8x128xf32, #tpu.memory_space<vmem>>, vector<8x128xf32>
    tpu.vector_store %arg5[%c0_8, %c0_9], %26 {strides = array<i32>} : memref<8x128xf32, #tpu.memory_space<vmem>>, vector<8x128xf32>,
    return
  }
  func.func @transform_0(%arg0: i32) -> (i32, i32) {
    %c0_i32 = arith.constant 0 : i32
    %c0_i32_0 = arith.constant 0 : i32
    return %arg0, %c0_i32 : i32, i32
  }
  func.func @transform_1(%arg0: i32) -> (i32, i32) {
    %c0_i32 = arith.constant 0 : i32
    %c0_i32_0 = arith.constant 0 : i32
    %c0_i32_1 = arith.constant 0 : i32
    return %c0_i32, %c0_i32_0 : i32, i32
  }
  func.func @transform_2(%arg0: i32) -> (i32, i32) {
    %c0_i32 = arith.constant 0 : i32
    %c0_i32_0 = arith.constant 0 : i32
    %c0_i32_1 = arith.constant 0 : i32
    return %c0_i32, %c0_i32_0 : i32, i32
  }
  func.func @transform_3(%arg0: i32) -> (i32, i32) {
    %c0_i32 = arith.constant 0 : i32
    %c0_i32_0 = arith.constant 0 : i32
    return %arg0, %c0_i32 : i32, i32
  }
  func.func @transform_4(%arg0: i32) -> (i32, i32) {
    %c0_i32 = arith.constant 0 : i32
    %c0_i32_0 = arith.constant 0 : i32
    return %arg0, %c0_i32 : i32, i32
  }
}

</mosaic_0001>

<bundles_post_ra>
// kernel: custom-call.5
= control target key start
LH: loop header
LB: loop body
LE: loop exit
PB: predicated region body
PF: predicated region fallthrough
CT: control target
= control target key end

     0   :  { %s6_s0 = inlined_call_operand.vmem [shape: u32[2,8], index: 0, kind: output, shape index: {}]  }

// kernel: squeeze.7
= control target key start
LH: loop header
LB: loop body
LE: loop exit
PB: predicated region body
PF: predicated region fallthrough
CT: control target
= control target key end

     0   :  { %vm7_vm0 = vcmask 64512   ;;  %s39_s0 = inlined_call_operand.vmem [shape: s32[16], index: 0, kind: input, shape index: {}]   ;;  %s40_s1 = inlined_call_operand.vmem [shape: s32[2,8], index: 1, kind: output, shape index: {}]  }
   0x1   :  { %v4_v0 = vld [vmem:[%s39_s0] sm:$0x1]  ;;  %s22_s0 = smov 120  }
   0x2   :  { %5 = vst [vmem:[#allocation1] sm:$0x1] %v4_v0 }
   0x9   :  { %v9_v1 = vld [vmem:[#allocation1] sm:$0x1]  }
   0xa   :  { %v6_v2 = vld [vmem:[#allocation1] sm:$0x1]   ;;  %10 = vrot.lane.b32.xlu0 %v9_v1, %s22_s0 }
   0xb   :  { %8 = vst.msk [vmem:[#allocation0] sm:$0x1] %vm7_vm0, %v6_v2  }
  0x7c   :  { %v11_v3 = vpop.permute.xlu0 %10  }
  0x7d   :  { %14 = vst.msk [vmem:[#allocation0 + $0x1] sm:$0x1] %vm7_vm0, %v11_v3  }
  0x84   :  { %v18_v4 = vld [vmem:[#allocation0] sm:$0x3] }
  0x85   :  { %20 = vst [vmem:[%s40_s1] sm:$0x3] %v18_v4 }

// kernel: multi_sequence_rope.1
= control target key start
LH: loop header
LB: loop body
LE: loop exit
PB: predicated region body
PF: predicated region fallthrough
CT: control target
= control target key end

     0   :  { %s680_s15 = smov 0   ;;  %s742_s0 = inlined_call_operand.vmem [shape: f32[16,1], index: 0, kind: input, shape index: {}]   ;;  %s743_s1 = inlined_call_operand.vmem [shape: f32[1,16], index: 1, kind: input, shape index: {}]   ;;  %s744_s2 = inlined_call_operand.vmem [shape: f32[1,128], index: 2, kind: input, shape index: {}]   ;;  %s745_s3 = inlined_call_operand.vmem [shape: f32[16,128], index: 3, kind: input, shape index: {}]   ;;  %s746_s4 = inlined_call_operand.vmem [shape: f32[16,128], index: 4, kind: output, shape index: {}]  }
   0x1 LB: > { %s583_s16 = sadd.s32 4294967295, %s639_s15   ;;  %p587_p0 = scmp.ge.s32.totalorder %s639_s15, 1  ;;  %s639_s15 = sphi %s680_s15, %s14_s15  }
   0x2   : > { %p170_p1 = scmp.lt.s32.totalorder %s639_s15, 3 }
   0x4   : > { %p171_p2 = pnand %p587_p0, %p170_p1 }
   0x5   : > { %p198_p3 = scmp.lt.s32.totalorder (!%p171_p2), %s583_s16, 1  ;;  %v641_v0 = vmov (!%p171_p2), 0   ;;  %s642_s24 = smov (!%p171_p2), 112   ;;  %v591_v3 = vld [vmem:[%s743_s1] ss:$0 sm:$0xff] (!%p171_p2) }
   0x6   : > { %174 = sbr.rel (%p171_p2) target bundleno = 375 (0x177), region = 36  ;;  %628 = vset.pattern.permute.xlu0 (!%p171_p2), %v641_v0  ;;  %v643_v16 = vmov (!%p171_p2), 683565275   ;;  %v644_v18 = vmov (!%p171_p2), 2475754826   ;;  %s649_s27 = smov (!%p171_p2), 16  }
   0x7   : > { %v645_v21 = vmov (!%p171_p2), 2131351028   ;;  %v646_v24 = vmov (!%p171_p2), 2102212464   ;;  %v647_v27 = vmov (!%p171_p2), 920167782  }
   0x8   : > { %v648_v30 = vmov (!%p171_p2), 1326507024   ;;  %s650_s28 = smov (!%p171_p2), 32   ;;  %s651_s29 = smov (!%p171_p2), 48  }
   0x9   : > { %s652_s30 = smov (!%p171_p2), 64   ;;  %s653_s5 = smov (!%p171_p2), 80  }
   0xa   : > { %s654_s6 = smov (!%p171_p2), 96  }
   0xd   : > { %s748_s16 = smov (!%p198_p3, %s583_s16), 1 }
   0xe   : > { %s689_s17 = sshll.u32 %s748_s16, 3 }
   0xf   : > { %s201_s20 = scalar_lea.vmem %s742_s0, %s689_s17  ;;  %s205_s23 = scalar_lea.vmem %s745_s3, %s689_s17 }
  0x10   : > { %v210_v1 = vld [vmem:[%s201_s20] sm:$0xff]  ;;  %s209_s11 = scalar_lea.vmem %s746_s4, %s689_s17 }
  0x11   : > { %214 = vperm.xlu0 %628, %v210_v1   ;;  %v699_v2 = vld [vmem:[%s205_s23] sm:$0xff] }
  0x12   : > { %498 = vrot.lane.b32.xlu1 %v699_v2, %s642_s24 }
  0x90   : > { %v215_v4 = vpop.permute.xlu0 %214 }
  0x91   : > { %v706_v5 = vmul.f32 %v591_v3, %v215_v4 }
  0x93   : > { %v227_v6 = vand.u32 2139095040, %v706_v5  ;;  %v224_v10 = vand.u32 2147483647, %v706_v5  ;;  %vm226_vm7 = vcmp.lt.s32.totalorder %v706_v5, 0  ;;  %vm316_vm15 = vweird.f32 %v706_v5 }
  0x95   : > { %v228_v7 = vshrl.u32 %v227_v6, 23  ;;  %v231_v13 = vand.u32 8388607, %v224_v10  ;;  %vm225_vm8 = vcmp.le.f32.partialorder %v224_v10, 0.7853982 }
  0x97   : > { %v592_v8 = vadd.s32 4294967169, %v228_v7  ;;  %v232_v32 = vor.u32 8388608, %v231_v13 }
  0x99   : > { %v234_v9 = vadd.s32 1, %v592_v8  ;;  %v272_v46 = vshll.u32 %v232_v32, 8 }
  0x9b   : > { %vm235_vm0 = vcmp.gt.s32.totalorder %v234_v9, 0 }
  0x9c   : > { %v236_v11 = vsel %vm235_vm0, %v234_v9, 0 }
  0x9d   : > { %v238_v12 = vand.u32 31, %v236_v11  ;;  %v237_v15 = vshrl.u32 %v236_v11, 5 }
  0x9f   : > { %v239_v14 = vsub.s32 32, %v238_v12  ;;  %v241_v17 = vshll.u32 %v643_v16, %v238_v12  ;;  %v244_v19 = vshll.u32 %v644_v18, %v238_v12  ;;  %v247_v23 = vshll.u32 %v645_v21, %v238_v12 }
  0xa0   : > { %v250_v26 = vshll.u32 %v646_v24, %v238_v12  ;;  %v253_v29 = vshll.u32 %v647_v27, %v238_v12  ;;  %vm256_vm1 = vcmp.lt.s32.totalorder %v237_v15, 1  ;;  %vm259_vm2 = vcmp.lt.s32.totalorder %v237_v15, 4 }
  0xa1   : > { %v242_v20 = vshrl.u32 %v644_v18, %v239_v14  ;;  %v245_v22 = vshrl.u32 %v645_v21, %v239_v14  ;;  %v248_v25 = vshrl.u32 %v646_v24, %v239_v14  ;;  %v251_v28 = vshrl.u32 %v647_v27, %v239_v14 }
  0xa2   : > { %v254_v31 = vshrl.u32 %v648_v30, %v239_v14  ;;  %v240_v41 = vshrl.u32 %v643_v16, %v239_v14  ;;  %vm258_vm3 = vcmp.lt.s32.totalorder %v237_v15, 3  ;;  %vm257_vm4 = vcmp.lt.s32.totalorder %v237_v15, 2 }
  0xa3   : > { %v243_v33 = vor.u32 %v242_v20, %v241_v17  ;;  %v246_v34 = vor.u32 %v245_v22, %v244_v19  ;;  %v249_v35 = vor.u32 %v248_v25, %v247_v23  ;;  %v252_v36 = vor.u32 %v251_v28, %v250_v26 }
  0xa4   : > { %v255_v37 = vor.u32 %v254_v31, %v253_v29 }
  0xa5   : > { %v261_v38 = vsel %vm259_vm2, %v249_v35, 2102212464  ;;  %v264_v39 = vsel %vm256_vm1, %v243_v33, %v246_v34  ;;  %v268_v40 = vsel %vm256_vm1, %v246_v34, %v249_v35  ;;  %v265_v42 = vsel %vm259_vm2, %v252_v36, 920167782 }
  0xa6   : > { %v269_v43 = vsel %vm259_vm2, %v255_v37, 1326507024  ;;  %v266_v44 = vsel %vm258_vm3, %v249_v35, %v265_v42  ;;  %v260_v47 = vsel %vm256_vm1, %v240_v41, %v243_v33  ;;  %v262_v48 = vsel %vm258_vm3, %v246_v34, %v261_v38 }
  0xa7   : > { %v270_v45 = vsel %vm258_vm3, %v252_v36, %v269_v43  ;;  %v267_v49 = vsel %vm257_vm4, %v264_v39, %v266_v44  ;;  %v263_v55 = vsel %vm257_vm4, %v260_v47, %v262_v48  ;;  %v508_v47 = vlaneseq }
  0xa8   : > { %v271_v50 = vsel %vm257_vm4, %v268_v40, %v270_v45  ;;  %v715_v53 = vmul.u32.u64.low %v272_v46, %v267_v49  ;;  %v716_v54 = vmul.u32.u64.high %v272_v46, %v267_v49, %v715_v53  ;;  %v279_v57 = vmul.u32 %v272_v46, %v263_v55 }
  0xa9   : > { %v712_v51 = vmul.u32.u64.low %v272_v46, %v271_v50  ;;  %v713_v52 = vmul.u32.u64.high %v272_v46, %v271_v50, %v712_v51  ;;  %v504_v50 = vld [vmem:[%s744_s2] sm:$0x1]  ;;  %vm453_vm1 = vcmask 130048   ;;  %vm455_vm2 = vcmask 261120  }
  0xaa   : > { %v282_v56 = vadd.s32 1, %v716_v54  ;;  %v509_v51 = vshrl.u32 %v508_v47, 7  ;;  %vm505_vm0 = vcmp.gt.f32.partialorder %v504_v50, 0.5  ;;  %vm457_vm3 = vcmask 392192  }
  0xab   : > { %vm281_vm5 = vc.u32 %v713_v52, %v715_v53  ;;  %v280_v8 = vadd.s32 %v715_v53, %v713_v52  ;;  %v507_v55 = vsel %vm505_vm0, 1, %v641_v0  ;;  %vm459_vm4 = vcmask 523264  }
  0xac   : > { %v283_v58 = vsel %vm281_vm5, %v282_v56, %v716_v54  ;;  %v510_v54 = vsub.s32 0, %v509_v51  ;;  %vm461_vm5 = vcmask 654336  }
  0xad   : > { %v284_v59 = vadd.s32 %v283_v58, %v279_v57 }
  0xaf   : > { %v285_v60 = vadd.s32 536870912, %v284_v59 }
  0xb1   : > { %v286_v61 = vshrl.u32 %v285_v60, 30 }
  0xb3   : > { %v287_v62 = vshll.u32 %v286_v61, 30  ;;  %v310_v21 = vsub.s32 4, %v286_v61 }
  0xb5   : > { %v288_v63 = vsub.s32 %v284_v59, %v287_v62  ;;  %v311_v24 = vsel %vm226_vm7, %v310_v21, %v286_v61  ;;  %v511_v59 = vrot.slane %v507_v55, %v510_v54 }
  0xb6   : > { %v313_v26 = vsel %vm225_vm8, 0, %v311_v24 }
  0xb7   : > { %v290_v1 = vsub.s32 0, %v288_v63  ;;  %v420_v27 = vadd.s32 3, %v313_v26  ;;  %v317_v28 = vand.u32 3, %v313_v26 }
  0xb9   : > { %v593_v3 = vmin.u32 %v290_v1, %v288_v63  ;;  %v421_v29 = vand.u32 3, %v420_v27  ;;  %vm322_vm9 = vcmp.eq.s32.totalorder %v317_v28, 2  ;;  %vm319_vm11 = vcmp.eq.s32.totalorder %v317_v28, 0 }
  0xba   : > { %vm318_vm13 = vcmp.lt.s32.totalorder %v317_v28, 2 }
  0xbb   : > { %v292_v4 = vclz %v593_v3  ;;  %vm426_vm10 = vcmp.eq.s32.totalorder %v421_v29, 2  ;;  %vm423_vm12 = vcmp.eq.s32.totalorder %v421_v29, 0  ;;  %vm422_vm14 = vcmp.lt.s32.totalorder %v421_v29, 2 }
  0xbd   : > { %v594_v6 = vadd.s32 4294967294, %v292_v4 }
  0xbf   : > { %vm595_vm6 = vcmp.lt.s32.totalorder %v594_v6, 0 }
  0xc0   : > { %v295_v7 = vsel %vm595_vm6, 0, %v594_v6  ;;  %vm463_vm6 = vcmask 785408  }
  0xc1   : > { %v296_v9 = vsub.s32 32, %v295_v7  ;;  %v300_v11 = vsub.s32 4294967266, %v295_v7  ;;  %v297_v12 = vshll.u32 %v288_v63, %v295_v7 }
  0xc3   : > { %v298_v13 = vshrl.u32 %v280_v8, %v296_v9  ;;  %v301_v14 = vadd.s32 127, %v300_v11 }
  0xc5   : > { %v299_v15 = vor.u32 %v298_v13, %v297_v12  ;;  %v302_v16 = vshll.u32 %v301_v14, 23 }
  0xc7   : > { %v303_v17 = vor.u32 4788187, %v302_v16  ;;  %v306_v19 = vcvt.s32.f32 %v299_v15 }
  0xc9   : > { %v304_v18 = vand.u32 2147483647, %v303_v17 }
  0xcb   : > { %v307_v20 = vmul.f32 %v306_v19, %v304_v18 }
  0xcd   : > { %v308_v22 = vxor.u32 2147483648, %v307_v20 }
  0xcf   : > { %v309_v23 = vsel %vm226_vm7, %v308_v22, %v307_v20  ;;  %vm465_vm7 = vcmask 916480  }
  0xd0   : > { %v312_v25 = vsel %vm225_vm8, %v706_v5, %v309_v23  ;;  %v499_v5 = vpop.permute.xlu1 %498  ;;  %vm512_vm8 = vcmp.eq.s32.totalorder %v511_v59, 1 }
  0xd1   : > { %629 = vcosq.f32 %v312_v25  ;;  %v506_v9 = vsub.f32 0.0, %v499_v5 }
  0xd2   : > { %631 = vsinq.f32 %v312_v25 }
  0xdb   : > { %v630_v30 = vpop.eup %629 }
  0xdc   : > { %v632_v31 = vpop.eup %631  ;;  %v323_v32 = vxor.u32 2147483648, %v630_v30 }
  0xdd   : > { %v320_v33 = vxor.u32 2147483648, %v632_v31 }
  0xde   : > { %v324_v34 = vsel %vm322_vm9, %v323_v32, %v632_v31  ;;  %v428_v10 = vsel %vm426_vm10, %v323_v32, %v632_v31 }
  0xdf   : > { %v321_v35 = vsel %vm319_vm11, %v630_v30, %v320_v33  ;;  %v425_v36 = vsel %vm423_vm12, %v630_v30, %v320_v33 }
  0xe0   : > { %v325_v37 = vsel %vm318_vm13, %v321_v35, %v324_v34  ;;  %v429_v38 = vsel %vm422_vm14, %v425_v36, %v428_v10 }
  0xe1   : > { %v326_v39 = vsel %vm316_vm15, nan, %v325_v37  ;;  %v430_v40 = vsel %vm316_vm15, nan, %v429_v38 }
  0xe2   : > { %468 = vrot.lane.b32.xlu1 %v430_v40, %s649_s27  ;;  %432 = vrot.lane.b32.xlu0 %v326_v39, %s649_s27 }
  0xe6   : > { %435 = vrot.lane.b32.xlu1 %v326_v39, %s650_s28  ;;  %471 = vrot.lane.b32.xlu0 %v430_v40, %s650_s28 }
  0xea   : > { %438 = vrot.lane.b32.xlu1 %v326_v39, %s651_s29  ;;  %474 = vrot.lane.b32.xlu0 %v430_v40, %s651_s29 }
  0xee   : > { %441 = vrot.lane.b32.xlu1 %v326_v39, %s652_s30  ;;  %477 = vrot.lane.b32.xlu0 %v430_v40, %s652_s30 }
  0xf2   : > { %444 = vrot.lane.b32.xlu1 %v326_v39, %s653_s5  ;;  %480 = vrot.lane.b32.xlu0 %v430_v40, %s653_s5 }
  0xf6   : > { %483 = vrot.lane.b32.xlu1 %v430_v40, %s654_s6  ;;  %447 = vrot.lane.b32.xlu0 %v326_v39, %s654_s6 }
  0xfa   : > { %486 = vrot.lane.b32.xlu1 %v430_v40, %s642_s24  ;;  %450 = vrot.lane.b32.xlu0 %v326_v39, %s642_s24 }
  0xfe   : > { %501 = vrot.lane.b32.xlu0 %v699_v2, %s649_s27 }
 0x154   : > { %v469_v41 = vpop.permute.xlu1 %468  ;;  %v433_v42 = vpop.permute.xlu0 %432 }
 0x155   : > { %v454_v58 = vsel %vm453_vm1, %v326_v39, %v433_v42  ;;  %v489_v61 = vsel %vm453_vm1, %v430_v40, %v469_v41 }
 0x158   : > { %v436_v43 = vpop.permute.xlu1 %435  ;;  %v472_v44 = vpop.permute.xlu0 %471 }
 0x159   : > { %v456_v60 = vsel %vm455_vm2, %v454_v58, %v436_v43  ;;  %v490_v63 = vsel %vm455_vm2, %v489_v61, %v472_v44 }
 0x15c   : > { %v439_v45 = vpop.permute.xlu1 %438  ;;  %v475_v46 = vpop.permute.xlu0 %474 }
 0x15d   : > { %v458_v62 = vsel %vm457_vm3, %v456_v60, %v439_v45  ;;  %v491_v4 = vsel %vm457_vm3, %v490_v63, %v475_v46 }
 0x160   : > { %v442_v48 = vpop.permute.xlu1 %441  ;;  %v478_v49 = vpop.permute.xlu0 %477 }
 0x161   : > { %v460_v1 = vsel %vm459_vm4, %v458_v62, %v442_v48  ;;  %v492_v0 = vsel %vm459_vm4, %v491_v4, %v478_v49 }
 0x164   : > { %v445_v52 = vpop.permute.xlu1 %444  ;;  %v481_v53 = vpop.permute.xlu0 %480 }
 0x165   : > { %v462_v6 = vsel %vm461_vm5, %v460_v1, %v445_v52  ;;  %v493_v11 = vsel %vm461_vm5, %v492_v0, %v481_v53 }
 0x168   : > { %v484_v56 = vpop.permute.xlu1 %483  ;;  %v448_v57 = vpop.permute.xlu0 %447 }
 0x169   : > { %v464_v7 = vsel %vm463_vm6, %v462_v6, %v448_v57  ;;  %v494_v13 = vsel %vm463_vm6, %v493_v11, %v484_v56 }
 0x16c   : > { %v451_v3 = vpop.permute.xlu0 %450  ;;  %v487_v8 = vpop.permute.xlu1 %486 }
 0x16d   : > { %v466_v12 = vsel %vm465_vm7, %v464_v7, %v451_v3  ;;  %v495_v15 = vsel %vm465_vm7, %v494_v13, %v487_v8 }
 0x16e   : > { %v514_v17 = vmul.f32 %v699_v2, %v466_v12 }
 0x170   : > { %v502_v14 = vpop.permute.xlu0 %501 }
 0x171   : > { %v513_v16 = vsel %vm512_vm8, %v506_v9, %v502_v14 }
 0x172   : > { %v515_v18 = vmul.f32 %v513_v16, %v495_v15 }
 0x174   : > { %v516_v19 = vadd.f32 %v515_v18, %v514_v17 }
 0x176   : > { %517 = vst [vmem:[%s209_s11] sm:$0xff] %v516_v19 }
 0x177 PF: > { %s14_s15 = sadd.s32 1, %s639_s15  }
 0x178   : > { %p11_p4 = scmp.ge.s32.totalorder %s14_s15, 4  }
 0x17a   :  { %13 = sbr.rel (!%p11_p4) target bundleno = 1 (0x1), region = 69 }

</bundles_post_ra>
